<compile_context>
chip_gen: v7x
topology: tpu7x:2x2x1
jax: 0.10.0
libtpu: 0.0.40
codegen_flags: <defaults>
</compile_context>

<pallas_src>
import math

import jax
import jax.numpy as jnp
from jax import lax
from jax.experimental import pallas as pl
from jax.experimental.pallas import tpu as pltpu


def _choose_tile(dim, preferred, align):
    """Largest multiple of `align` that divides `dim` and is <= preferred, else full dim."""
    if dim <= preferred:
        return dim
    t = (preferred // align) * align
    while t >= align:
        if dim % t == 0:
            return t
        t -= align
    return dim


# ---------------------------------------------------------------------------
# Weight prep: row-wise L2 normalize (torch F.normalize, dim=1), cast to bf16,
# and write TRANSPOSED so the main matmul contracts the rhs on its leading dim
# (classes land lane-dense on the logits output). One-time cost per weight.
# ---------------------------------------------------------------------------
def _normalize_weight_t_kernel(w_ref, wnt_ref):
    w = w_ref[...].astype(jnp.float32)
    ss = jnp.sum(w * w, axis=-1, keepdims=True)
    # rsqrt(max(ss, eps^2)) == 1/max(||w||, eps) for any non-degenerate row (EUP, frees VALU).
    wn = w * lax.rsqrt(jnp.maximum(ss, jnp.float32(1e-24)))
    wnt_ref[...] = jnp.transpose(wn).astype(jnp.bfloat16)   # (tc, H) -> (H, tc)


def normalize_weight_t(weight, *, tc=None):
    """weight: (C, H) f32 -> (H, C) bf16, rows L2-normalized (before the transpose)."""
    C, H = weight.shape
    if tc is None:
        tc = _choose_tile(C, 512, 128)
    assert C % tc == 0
    return pl.pallas_call(
        _normalize_weight_t_kernel,
        out_shape=jax.ShapeDtypeStruct((H, C), jnp.bfloat16),
        grid=(C // tc,),
        in_specs=[pl.BlockSpec((tc, H), lambda i: (i, 0))],
        out_specs=pl.BlockSpec((H, tc), lambda i: (0, i)),
        compiler_params=pltpu.CompilerParams(dimension_semantics=("parallel",)),
    )(weight.astype(jnp.float32))


# ---------------------------------------------------------------------------
# Main kernel: normalized-x @ normalized-W^T logits + online-softmax cross-entropy.
# Grid = (B // tb  [parallel],  C // tc  [arbitrary, reduction]).
# ---------------------------------------------------------------------------
def _classifier_loss_kernel(x_ref, wnt_ref, y_ref, logits_ref, loss_ref,
                            xn_scratch, m_scratch, l_scratch, t_scratch):
    # x_ref:   (tb, H)  f32   resident across the C axis (same block index for all j)
    # wnt_ref: (H, tc)  bf16  pre-normalized, pre-transposed weight tile
    # y_ref:   (tb, 1)  int32
    # logits_ref: (tb, tc) f32   loss_ref: (tb, 1) f32 (per-example loss, finalized last tile)
    j = pl.program_id(1)

    @pl.when(j == 0)
    def _init():
        # Normalize the x tile once per B-tile (exact f32) and cache it in bf16 for the MXU.
        x = x_ref[...]
        ss = jnp.sum(x * x, axis=-1, keepdims=True)
        xn_scratch[...] = (x * lax.rsqrt(jnp.maximum(ss, jnp.float32(1e-24)))).astype(jnp.bfloat16)
        m_scratch[...] = jnp.full_like(m_scratch, -jnp.inf)
        l_scratch[...] = jnp.zeros_like(l_scratch)
        t_scratch[...] = jnp.zeros_like(t_scratch)

    # bf16 x bf16 -> f32 on the MXU; logits written lane-dense on the class axis.
    logits = jnp.dot(xn_scratch[...], wnt_ref[...], preferred_element_type=jnp.float32)
    logits_ref[...] = logits

    # Online logsumexp over the class (C) axis.
    m_prev = m_scratch[...]
    m_new = jnp.maximum(m_prev, jnp.max(logits, axis=-1, keepdims=True))
    alpha = jnp.exp(m_prev - m_new)
    l_scratch[...] = alpha * l_scratch[...] + jnp.sum(jnp.exp(logits - m_new), axis=-1, keepdims=True)
    m_scratch[...] = m_new

    # Accumulate the target logit (the label may fall in any C tile).
    # Note: out-of-range labels silently contribute 0 (PyTorch would error).
    tb, tc = logits_ref.shape
    class_ids = j * tc + lax.broadcasted_iota(jnp.int32, (tb, tc), dimension=1)
    t_scratch[...] = t_scratch[...] + jnp.sum(
        jnp.where(class_ids == y_ref[...], logits, jnp.float32(0.0)),
        axis=-1, keepdims=True)

    @pl.when(j == pl.num_programs(1) - 1)
    def _finalize():
        # per-example CE = logsumexp(logits) - logits[target]
        loss_ref[...] = m_scratch[...] + jnp.log(l_scratch[...]) - t_scratch[...]


def classifier_loss(x, weight, y, *, tb=None, tc=None):
    """x: (B, H) f32, weight: (C, H) f32, y: (B,) int -> (mean CE loss scalar, logits (B, C) f32)."""
    B, H = x.shape
    C, H2 = weight.shape
    assert H == H2
    if tb is None:
        tb = _choose_tile(B, 256, 8)
    if tc is None:
        tc = _choose_tile(C, 512, 128)
    assert B % tb == 0 and C % tc == 0

    # One-time weight prep: normalize rows and emit (H, C) bf16 directly (transpose fused).
    wn_t = normalize_weight_t(weight, tc=tc)

    y2d = y.astype(jnp.int32).reshape(B, 1)

    logits, per_example = pl.pallas_call(
        _classifier_loss_kernel,
        out_shape=(
            jax.ShapeDtypeStruct((B, C), jnp.float32),
            jax.ShapeDtypeStruct((B, 1), jnp.float32),
        ),
        grid=(B // tb, C // tc),
        in_specs=[
            pl.BlockSpec((tb, H), lambda i, j: (i, 0)),     # x: resident across C tiles
            pl.BlockSpec((H, tc), lambda i, j: (0, j)),     # wn^T: streamed over C
            pl.BlockSpec((tb, 1), lambda i, j: (i, 0)),     # labels
        ],
        out_specs=(
            pl.BlockSpec((tb, tc), lambda i, j: (i, j)),    # logits: lane-dense on C
            pl.BlockSpec((tb, 1), lambda i, j: (i, 0)),     # per-example loss (finalized)
        ),
        scratch_shapes=[
            pltpu.VMEM((tb, H), jnp.bfloat16),              # cached normalized x tile
            pltpu.VMEM((tb, 1), jnp.float32),               # running max m
            pltpu.VMEM((tb, 1), jnp.float32),               # running sum l
            pltpu.VMEM((tb, 1), jnp.float32),               # target-logit accumulator
        ],
        compiler_params=pltpu.CompilerParams(
            dimension_semantics=("parallel", "arbitrary"),  # B across TCs (v7x), C is a reduction
            vmem_limit_bytes=48 * 1024 * 1024,
        ),
    )(x.astype(jnp.float32), wn_t, y2d)

    loss = jnp.mean(per_example)   # mean reduction over the batch (plain-JAX glue)
    return loss, logits


def xavier_normal(key, n_class, hidden_size, gain=1.0):
    # Matches nn.init.xavier_normal_ for a 2D (fan_out=n_class, fan_in=hidden_size) tensor.
    std = gain * math.sqrt(2.0 / (n_class + hidden_size))
    return std * jax.random.normal(key, (n_class, hidden_size), dtype=jnp.float32)


# TODO(synk): FocalLoss branch (focal_loss=True) and label_smoothing>0 are not implemented;
# this covers the module's default CrossEntropyLoss path.

if __name__ == "__main__":
    n_class = 256
    hidden_size = 64
    batch = 32

    key = jax.random.PRNGKey(0)
    k_w, k_x, k_y = jax.random.split(key, 3)

    weight = xavier_normal(k_w, n_class, hidden_size)          # nn.Parameter(n_class, hidden_size)
    x = jax.random.normal(k_x, (batch, hidden_size), dtype=jnp.float32)
    y = jax.random.randint(k_y, (batch,), 0, n_class, dtype=jnp.int32)

    # Small tiles so the demo exercises the real (2 x 2) tiled grid + online accumulation.
    loss, logits = classifier_loss(x, weight, y, tb=16, tc=128)
    jax.block_until_ready((loss, logits))

    # Pure-JAX f32 reference (kernel uses bf16 on the MXU, hence the loosened tolerance).
    def ref(x, w, y):
        xn = x / jnp.maximum(jnp.linalg.norm(x, axis=1, keepdims=True), 1e-12)
        wn = w / jnp.maximum(jnp.linalg.norm(w, axis=1, keepdims=True), 1e-12)
        out = xn @ wn.T
        lse = jax.scipy.special.logsumexp(out, axis=-1)
        tgt = out[jnp.arange(out.shape[0]), y]
        return jnp.mean(lse - tgt), out

    ref_loss, ref_logits = ref(x, weight, y)
    assert jnp.allclose(logits, ref_logits, atol=2e-2, rtol=0), float(jnp.max(jnp.abs(logits - ref_logits)))
    assert jnp.allclose(loss, ref_loss, atol=2e-2, rtol=0), (float(loss), float(ref_loss))

    print("KERNEL_OK")
</pallas_src>

<mosaic_0001>
module attributes {stable_mosaic.version = 11 : i64} {
  func.func @_normalize_weight_t_kernel(%arg0: i32, %arg1: memref<128x64xf32, #tpu.memory_space<vmem>>, %arg2: memref<64x128xbf16, #tpu.memory_space<vmem>>) attributes {dimension_semantics = [#tpu.dimension_semantics<parallel>], iteration_bounds = array<i64: 2>, scalar_prefetch = 0 : i64, scratch_operands = 0 : i64, tpu.core_type = #tpu.core_type<tc>, window_params = [{transform_indices = @transform_0, window_bounds = array<i64: 128, 64>}, {transform_indices = @transform_1, window_bounds = array<i64: 64, 128>}]} {
    %c0 = arith.constant 0 : index
    %c0_0 = arith.constant 0 : index
    %0 = vector.load %arg1[%c0, %c0_0] : memref<128x64xf32, #tpu.memory_space<vmem>>, vector<128x64xf32>
    %1 = arith.mulf %0, %0 : vector<128x64xf32>
    %cst = arith.constant dense<0.000000e+00> : vector<128xf32>
    %2 = vector.multi_reduction <add>, %1, %cst [1] : vector<128x64xf32> to vector<128xf32>
    %3 = vector.shape_cast %2 : vector<128xf32> to vector<128x1xf32>
    %cst_1 = arith.constant 1.000000e-24 : f32
    %4 = vector.broadcast %cst_1 : f32 to vector<128x1xf32>
    %5 = arith.maximumf %3, %4 : vector<128x1xf32>
    %6 = math.rsqrt %5 : vector<128x1xf32>
    %7 = vector.broadcast %6 : vector<128x1xf32> to vector<128x64xf32>
    %8 = arith.mulf %0, %7 : vector<128x64xf32>
    %9 = tpu.transpose %8, [1, 0] : vector<128x64xf32> -> vector<64x128xf32>
    %10 = arith.truncf %9 : vector<64x128xf32> to vector<64x128xbf16>
    %c0_2 = arith.constant 0 : index
    %c0_3 = arith.constant 0 : index
    %11 = vector.load %arg2[%c0_2, %c0_3] : memref<64x128xbf16, #tpu.memory_space<vmem>>, vector<64x128xbf16>
    tpu.vector_store %arg2[%c0_2, %c0_3], %10 {strides = array<i32>} : memref<64x128xbf16, #tpu.memory_space<vmem>>, vector<64x128xbf16>,
    return
  }
  func.func @transform_0(%arg0: i32) -> (i32, i32) {
    %c0_i32 = arith.constant 0 : i32
    %c0_i32_0 = arith.constant 0 : i32
    return %arg0, %c0_i32 : i32, i32
  }
  func.func @transform_1(%arg0: i32) -> (i32, i32) {
    %c0_i32 = arith.constant 0 : i32
    %c0_i32_0 = arith.constant 0 : i32
    return %c0_i32, %arg0 : i32, i32
  }
}

</mosaic_0001>

<bundles_post_ra>
// kernel: tpu_custom_call.1
= control target key start
LH: loop header
LB: loop body
LE: loop exit
PB: predicated region body
PF: predicated region fallthrough
CT: control target
= control target key end

     0   :  { %6 = vsyncpa [#allocation3], 0  ;;  %s811_s0 = inlined_call_operand.vmem [shape: f32[256,64], index: 0, kind: input, shape index: {}]   ;;  %s812_s1 = inlined_call_operand.hbm [shape: bf16[64,256], index: 1, kind: output, shape index: {}]  }
   0x1   :  { %8 = vsyncpa [#allocation3 + $0x1], 0  ;;  %s595_s6 = smov 0   ;;  %s597_s7 = smov 0  }
   0x2   :  { %s599_s8 = smov 0   ;;  %s601_s9 = smov 0  }
   0x3 LB: > { %s616_s10 = sadd.s32 4294967295, %s579_s9   ;;  %s393_s11 = sadd.s32 4294967294, %s579_s9   ;;  %s579_s9 = sphi %s601_s9, %s818_s9   ;;  %s575_s8 = sphi %s599_s8, %s817_s8   ;;  %s571_s7 = sphi %s597_s7, %s816_s7   ;;  %s567_s6 = sphi %s595_s6, %s815_s6  }
   0x4   : > { %s620_s12 = sadd.s32 1, %s579_s9   ;;  %s47_s13 = sadd.s32 1, %s575_s8 }
   0x5   : > { %s44_s14 = ssub.s32 %s579_s9, %s620_s12  ;;  %p57_p0 = scmp.ne.s32.totalorder %s575_s8, %s571_s7 }
   0x6   : > { %p45_p1 = scmp.eq.s32.totalorder %s44_s14, 0  ;;  %p58_p2 = scmp.eq.s32.totalorder %s616_s10, 1 }
   0x7   : > { %p63_p3 = scmp.ne.s32.totalorder %s571_s7, %s567_s6  ;;  %p64_p4 = scmp.eq.s32.totalorder %s393_s11, 1 }
   0x8   : > { %s631_s15 = scalar_select %p45_p1, %s575_s8, %s47_s13  }
   0x9   : > { %p633_p5 = por %p58_p2, %p57_p0  ;;  %p637_p6 = por %p64_p4, %p63_p3 }
   0xa   : > { %p396_p7 = scmp.ge.s32.totalorder %s579_s9, 1  ;;  %p91_p8 = scmp.lt.s32.totalorder %s579_s9, 3 }
   0xc   : > { %p92_p9 = pnand %p396_p7, %p91_p8 }
   0xd   : > { %s398_s18 = sshll.u32 (!%p92_p9), %s616_s10, 4  ;;  %vm149_vm0 = vcmask (!%p92_p9), 523264   ;;  %s108_s23 = sand.u32 (!%p92_p9), 1, %s571_s7  }
   0xe   : > { %95 = sbr.rel (%p92_p9) target bundleno = 360 (0x168), region = 24  ;;  %p112_p10 = scmp.lt.s32.totalorder (!%p92_p9), %s398_s18, 31 }
   0xf   : > { %s397_s24 = sshll.u32 (!%p92_p9), %s108_s23, 5  ;;  %s409_s27 = sshll.u32 (!%p92_p9), %s616_s10, 6 }
  0x10   : > { %s110_s25 = scalar_lea.vmem (!%p92_p9), [#allocation2], %s397_s24  ;;  %s768_s30 = scalar_lea.hbm (!%p92_p9), %s812_s1, %s409_s27 }
  0x11   : > { %s331_s26 = sshll.u32 (!%p92_p9), %s110_s25, 4  ;;  %s770_s2 = scalar_lea.sflag (!%p92_p9), [#allocation3], %s108_s23  ;;  %s763_s26 = int_to_ptr.vmem [resolvable:$true] %s331_s26 }
  0x12   : > { %s517_s3 = scalar_lea.vmem (!%p92_p9), %s763_s26, 512  ;;  %s581_s4 = smov (!%p92_p9), [#allocation2]  }
  0x13   : > { %p518_p11 = scmp.ne.s32.totalorder (!%p92_p9), %s763_s26, %s517_s3  ;;  %s521_s5 = sshll.u32 (!%p92_p9), %s581_s4, 4  ;;  %s522_s5 = int_to_ptr.vmem [resolvable:$false] %s521_s5 }
  0x14   : > { %s523_s10 = scalar_lea.vmem (!%p92_p9), %s522_s5, 1024  ;;  %p524_p0 = scmp.lt.s32.totalorder (!%p92_p9), %s763_s26, %s522_s5 }
  0x15   : > { %s820_s18 = smov (!%p112_p10, %s398_s18), 31  ;;  %p519_p12 = pnand %p518_p11, %p633_p5 }
  0x16   : > { %s399_s19 = sshll.u32 %s820_s18, 3  ;;  %p525_p1 = scmp.lt.s32.totalorder %s523_s10, %s517_s3 }
  0x17   : > { %s647_s22 = scalar_lea.vmem %s811_s0, %s399_s19  ;;  %p520_p13 = pneg %p519_p12 }
  0x18   : > { %v650_v0 = vld [vmem:[%s647_s22] sm:$0xff]  ;;  %v653_v1 = vld [vmem:[%s647_s22 + $0x8] sm:$0xff]  ;;  %v656_v2 = vld [vmem:[%s647_s22 + $0x10] sm:$0xff]  ;;  %p526_p2 = por %p525_p1, %p524_p0 }
  0x19   : > { %v133_v3 = vmul.f32 %v650_v0, %v650_v0  ;;  %v134_v4 = vmul.f32 %v653_v1, %v653_v1  ;;  %v135_v5 = vmul.f32 %v656_v2, %v656_v2  ;;  %v665_v6 = vld [vmem:[%s647_s22 + $0x18] sm:$0xff]  ;;  %v670_v8 = vld [vmem:[%s647_s22 + $0x20] sm:$0xff]  ;;  %v673_v9 = vld [vmem:[%s647_s22 + $0x28] sm:$0xff] }
  0x1a   : > { %v136_v7 = vmul.f32 %v665_v6, %v665_v6  ;;  %v137_v14 = vmul.f32 %v670_v8, %v670_v8  ;;  %v138_v15 = vmul.f32 %v673_v9, %v673_v9  ;;  %v684_v16 = vld [vmem:[%s647_s22 + $0x30] sm:$0xff]  ;;  %v687_v17 = vld [vmem:[%s647_s22 + $0x38] sm:$0xff]  ;;  %v696_v22 = vld [vmem:[%s647_s22 + $0x40] sm:$0xff]  ;;  %p527_p3 = pnand %p526_p2, %p520_p13 }
  0x1b   : > { %v150_v10 = vsel %vm149_vm0, %v133_v3, 0.0  ;;  %v156_v11 = vsel %vm149_vm0, %v135_v5, 0.0  ;;  %v153_v12 = vsel %vm149_vm0, %v134_v4, 0.0  ;;  %v139_v20 = vmul.f32 %v684_v16, %v684_v16  ;;  %v699_v23 = vld [vmem:[%s647_s22 + $0x48] sm:$0xff]  ;;  %v708_v28 = vld [vmem:[%s647_s22 + $0x50] sm:$0xff]  ;;  %v711_v29 = vld [vmem:[%s647_s22 + $0x58] sm:$0xff] }
  0x1c   : > { %151 = vadd.xlane.f32.xlu0 %v150_v10  ;;  %157 = vadd.xlane.f32.xlu1 %v156_v11  ;;  %v159_v13 = vsel %vm149_vm0, %v136_v7, 0.0  ;;  %v162_v18 = vsel %vm149_vm0, %v137_v14, 0.0  ;;  %v165_v19 = vsel %vm149_vm0, %v138_v15, 0.0  ;;  %v140_v21 = vmul.f32 %v687_v17, %v687_v17  ;;  %v720_v34 = vld [vmem:[%s647_s22 + $0x60] sm:$0xff]  ;;  %v723_v35 = vld [vmem:[%s647_s22 + $0x68] sm:$0xff]  ;;  %v732_v40 = vld [vmem:[%s647_s22 + $0x70] sm:$0xff] }
  0x1d   : > { %v168_v24 = vsel %vm149_vm0, %v139_v20, 0.0  ;;  %v141_v26 = vmul.f32 %v696_v22, %v696_v22  ;;  %v142_v27 = vmul.f32 %v699_v23, %v699_v23  ;;  %v143_v32 = vmul.f32 %v708_v28, %v708_v28  ;;  %v735_v41 = vld [vmem:[%s647_s22 + $0x78] sm:$0xff] }
  0x1e   : > { %v171_v25 = vsel %vm149_vm0, %v140_v21, 0.0  ;;  %v144_v33 = vmul.f32 %v711_v29, %v711_v29  ;;  %v145_v38 = vmul.f32 %v720_v34, %v720_v34  ;;  %v146_v39 = vmul.f32 %v723_v35, %v723_v35 }
  0x1f   : > { %v174_v30 = vsel %vm149_vm0, %v141_v26, 0.0  ;;  %v177_v31 = vsel %vm149_vm0, %v142_v27, 0.0  ;;  %v180_v36 = vsel %vm149_vm0, %v143_v32, 0.0  ;;  %v147_v44 = vmul.f32 %v732_v40, %v732_v40 }
  0x20   : > { %154 = vadd.xlane.f32.xlu0 %v153_v12  ;;  %160 = vadd.xlane.f32.xlu1 %v159_v13  ;;  %v183_v37 = vsel %vm149_vm0, %v144_v33, 0.0  ;;  %v186_v42 = vsel %vm149_vm0, %v145_v38, 0.0  ;;  %v189_v43 = vsel %vm149_vm0, %v146_v39, 0.0  ;;  %v148_v45 = vmul.f32 %v735_v41, %v735_v41 }
  0x21   : > { %v192_v46 = vsel %vm149_vm0, %v147_v44, 0.0 }
  0x22   : > { %v195_v47 = vsel %vm149_vm0, %v148_v45, 0.0 }
  0x24   : > { %163 = vadd.xlane.f32.xlu0 %v162_v18  ;;  %166 = vadd.xlane.f32.xlu1 %v165_v19 }
  0x28   : > { %169 = vadd.xlane.f32.xlu0 %v168_v24  ;;  %172 = vadd.xlane.f32.xlu1 %v171_v25 }
  0x2c   : > { %175 = vadd.xlane.f32.xlu0 %v174_v30  ;;  %178 = vadd.xlane.f32.xlu1 %v177_v31 }
  0x30   : > { %181 = vadd.xlane.f32.xlu0 %v180_v36  ;;  %184 = vadd.xlane.f32.xlu1 %v183_v37 }
  0x34   : > { %187 = vadd.xlane.f32.xlu0 %v186_v42  ;;  %190 = vadd.xlane.f32.xlu1 %v189_v43 }
  0x38   : > { %193 = vadd.xlane.f32.xlu0 %v192_v46  ;;  %196 = vadd.xlane.f32.xlu1 %v195_v47 }
  0xa9   : > { %v152_v48 = vpop.xlane.xlu0 %151  ;;  %v158_v49 = vpop.xlane.xlu1 %157 }
  0xaa   : > { %v198_v50 = vmax.f32 %v152_v48, 1e-24  ;;  %v200_v51 = vmax.f32 %v158_v49, 1e-24 }
  0xac   : > { %485 = vrsqrt.f32 %v198_v50 }
  0xad   : > { %v155_v52 = vpop.xlane.xlu0 %154  ;;  %v161_v53 = vpop.xlane.xlu1 %160  ;;  %487 = vrsqrt.f32 %v200_v51 }
  0xae   : > { %v199_v54 = vmax.f32 %v155_v52, 1e-24  ;;  %v201_v55 = vmax.f32 %v161_v53, 1e-24 }
  0xb0   : > { %489 = vrsqrt.f32 %v199_v54 }
  0xb1   : > { %v164_v56 = vpop.xlane.xlu0 %163  ;;  %491 = vrsqrt.f32 %v201_v55  ;;  %v167_v58 = vpop.xlane.xlu1 %166 }
  0xb2   : > { %v202_v57 = vmax.f32 %v164_v56, 1e-24  ;;  %v203_v61 = vmax.f32 %v167_v58, 1e-24 }
  0xb4   : > { %493 = vrsqrt.f32 %v202_v57 }
  0xb5   : > { %v170_v63 = vpop.xlane.xlu0 %169  ;;  %495 = vrsqrt.f32 %v203_v61  ;;  %v173_v10 = vpop.xlane.xlu1 %172 }
  0xb6   : > { %v486_v59 = vpop.eup %485  ;;  %v204_v5 = vmax.f32 %v170_v63, 1e-24  ;;  %v205_v12 = vmax.f32 %v173_v10, 1e-24 }
  0xb7   : > { %v230_v60 = vmul.f32 %v486_v59, %v650_v0  ;;  %v488_v62 = vpop.eup %487 }
  0xb8   : > { %v232_v7 = vmul.f32 %v488_v62, %v656_v2  ;;  %497 = vrsqrt.f32 %v204_v5 }
  0xb9   : > { %246 = vxpose.xlu0.b32.start [1/16] (narrow) %v230_v60, 64  ;;  %v176_v13 = vpop.xlane.xlu0 %175  ;;  %499 = vrsqrt.f32 %v205_v12 }
  0xba   : > { %v490_v3 = vpop.eup %489  ;;  %v206_v15 = vmax.f32 %v176_v13, 1e-24 }
  0xbb   : > { %v231_v4 = vmul.f32 %v490_v3, %v653_v1  ;;  %v492_v11 = vpop.eup %491  ;;  %v179_v1 = vpop.xlane.xlu1 %178 }
  0xbc   : > { %v233_v0 = vmul.f32 %v492_v11, %v665_v6  ;;  %501 = vrsqrt.f32 %v206_v15  ;;  %v207_v20 = vmax.f32 %v179_v1, 1e-24 }
  0xbd   : > { %247 = vxpose.xlu0.b32.cont [2/16] (narrow) %v231_v4, 64  ;;  %v182_v21 = vpop.xlane.xlu0 %181 }
  0xbe   : > { %v494_v14 = vpop.eup %493  ;;  %503 = vrsqrt.f32 %v207_v20  ;;  %v208_v25 = vmax.f32 %v182_v21, 1e-24 }
  0xbf   : > { %v234_v18 = vmul.f32 %v494_v14, %v670_v8  ;;  %v496_v19 = vpop.eup %495  ;;  %v185_v26 = vpop.xlane.xlu1 %184 }
  0xc0   : > { %v235_v2 = vmul.f32 %v496_v19, %v673_v9  ;;  %505 = vrsqrt.f32 %v208_v25  ;;  %v209_v30 = vmax.f32 %v185_v26, 1e-24 }
  0xc1   : > { %248 = vxpose.xlu0.b32.cont [3/16] (narrow) %v232_v7, 64  ;;  %v188_v31 = vpop.xlane.xlu0 %187 }
  0xc2   : > { %v498_v24 = vpop.eup %497  ;;  %507 = vrsqrt.f32 %v209_v30  ;;  %v210_v33 = vmax.f32 %v188_v31, 1e-24 }
  0xc3   : > { %v236_v6 = vmul.f32 %v498_v24, %v684_v16  ;;  %v500_v27 = vpop.eup %499  ;;  %v191_v36 = vpop.xlane.xlu1 %190 }
  0xc4   : > { %v237_v8 = vmul.f32 %v500_v27, %v687_v17  ;;  %509 = vrsqrt.f32 %v210_v33  ;;  %v211_v38 = vmax.f32 %v191_v36, 1e-24 }
  0xc5   : > { %249 = vxpose.xlu0.b32.cont [4/16] (narrow) %v233_v0, 64  ;;  %v194_v39 = vpop.xlane.xlu0 %193 }
  0xc6   : > { %v502_v32 = vpop.eup %501  ;;  %511 = vrsqrt.f32 %v211_v38  ;;  %v212_v43 = vmax.f32 %v194_v39, 1e-24 }
  0xc7   : > { %v238_v9 = vmul.f32 %v502_v32, %v696_v22  ;;  %v197_v44 = vpop.xlane.xlu1 %196 }
  0xc8   : > { %v504_v37 = vpop.eup %503  ;;  %513 = vrsqrt.f32 %v212_v43  ;;  %v213_v46 = vmax.f32 %v197_v44, 1e-24 }
  0xc9   : > { %250 = vxpose.xlu0.b32.cont [5/16] (narrow) %v234_v18, 64  ;;  %v239_v16 = vmul.f32 %v504_v37, %v699_v23 }
  0xca   : > { %v506_v42 = vpop.eup %505  ;;  %515 = vrsqrt.f32 %v213_v46 }
  0xcb   : > { %v240_v17 = vmul.f32 %v506_v42, %v708_v28 }
  0xcc   : > { %v508_v45 = vpop.eup %507 }
  0xcd   : > { %251 = vxpose.xlu0.b32.cont [6/16] (narrow) %v235_v2, 64  ;;  %v241_v22 = vmul.f32 %v508_v45, %v711_v29 }
  0xce   : > { %v510_v47 = vpop.eup %509 }
  0xcf   : > { %v242_v23 = vmul.f32 %v510_v47, %v720_v34 }
  0xd0   : > { %v512_v48 = vpop.eup %511 }
  0xd1   : > { %252 = vxpose.xlu0.b32.cont [7/16] (narrow) %v236_v6, 64  ;;  %v243_v49 = vmul.f32 %v512_v48, %v723_v35 }
  0xd2   : > { %v514_v50 = vpop.eup %513 }
  0xd3   : > { %v244_v28 = vmul.f32 %v514_v50, %v732_v40 }
  0xd4   : > { %v516_v51 = vpop.eup %515 }
  0xd5   : > { %253 = vxpose.xlu0.b32.cont [8/16] (narrow) %v237_v8, 64  ;;  %v245_v52 = vmul.f32 %v516_v51, %v735_v41 }
  0xd9   : > { %254 = vxpose.xlu0.b32.cont [9/16] (narrow) %v238_v9, 64 }
  0xdd   : > { %255 = vxpose.xlu0.b32.cont [10/16] (narrow) %v239_v16, 64 }
  0xe1   : > { %256 = vxpose.xlu0.b32.cont [11/16] (narrow) %v240_v17, 64 }
  0xe5   : > { %257 = vxpose.xlu0.b32.cont [12/16] (narrow) %v241_v22, 64 }
  0xe9   : > { %258 = vxpose.xlu0.b32.cont [13/16] (narrow) %v242_v23, 64 }
  0xed   : > { %259 = vxpose.xlu0.b32.cont [14/16] (narrow) %v243_v49, 64 }
  0xf1   : > { %260 = vxpose.xlu0.b32.cont [15/16] (narrow) %v244_v28, 64 }
  0xf5   : > { %261 = vxpose.xlu0.b32.end [16/16] (narrow) %v245_v52, 64 }
 0x139   : > { %v262_v29 = vpop.trf.xlu0 }
 0x13d   : > { %v263_v53 = vpop.trf.xlu0 }
 0x13e   : > { %v423_v54 = vpack.c.bf16 %v263_v53, %v262_v29 }
 0x140   : > { %424 = vst [vmem:[%s110_s25] sm:$0xff] %v423_v54  }
 0x141   : > { %v264_v34 = vpop.trf.xlu0 }
 0x145   : > { %v265_v55 = vpop.trf.xlu0 }
 0x146   : > { %v428_v35 = vpack.c.bf16 %v265_v55, %v264_v34 }
 0x148   : > { %440 = vst [vmem:[%s110_s25 + $0x8] sm:$0xff] %v428_v35  }
 0x149   : > { %v266_v56 = vpop.trf.xlu0 }
 0x14d   : > { %v267_v40 = vpop.trf.xlu0 }
 0x14e   : > { %v433_v57 = vpack.c.bf16 %v267_v40, %v266_v56 }
 0x150   : > { %441 = vst [vmem:[%s110_s25 + $0x10] sm:$0xff] %v433_v57  }
 0x151   : > { %v268_v41 = vpop.trf.xlu0 }
 0x155   : > { %v269_v58 = vpop.trf.xlu0 }
 0x156   : > { %v438_v59 = vpack.c.bf16 %v269_v58, %v268_v41 }
 0x158   : > { %442 = vst [vmem:[%s110_s25 + $0x18] sm:$0xff] %v438_v59  }
 0x159   : > { %530 = shalt.err (!%p527_p3)
}
 0x15a   : > { %s531_s11 = scalar_lea.hbm %s768_s30, 512  ;;  %s535_s18 = scalar_lea.hbm %s812_s1, 1024 }
 0x15b   : > { %p532_p4 = scmp.ne.s32.totalorder %s768_s30, %s531_s11  ;;  %p536_p9 = scmp.lt.u32.totalorder %s768_s30, %s812_s1 }
 0x15c   : > { %p537_p10 = scmp.lt.u32.totalorder %s535_s18, %s531_s11  ;;  %p539_p12 = scmp.lt.u32.totalorder %s531_s11, %s768_s30 }
 0x15d   : > { %p533_p7 = pnand %p532_p4, %p633_p5 }
 0x15e   : > { %p538_p11 = por %p537_p10, %p536_p9 }
 0x15f   : > { %p534_p8 = pneg %p533_p7 }
 0x160   : > { %p540_p13 = por %p539_p12, %p538_p11 }
 0x162   : > { %p541_p0 = pnand %p540_p13, %p534_p8 }
 0x164   : > { %544 = shalt.err (!%p541_p0)
}
 0x165   : > { %s582_s21 = smov 64   ;;  %s583_s22 = smov 128  }
 0x166   : > { %s584_s23 = smov 4  }
 0x167   : > { %443 = dma.vmem_to_hbm [thread:$0]  (%p633_p5), %s763_s26, 512, %s768_s30, %s770_s2, %s582_s21, %s583_s22, %s584_s23  }
 0x168 PF: > { %p449_p1 = scmp.ge.s32.totalorder %s579_s9, 2  ;;  %s346_s24 = sand.u32 1, %s567_s6  }
 0x169   : > { %s347_s25 = scalar_lea.sflag [#allocation3], %s346_s24 }
 0x16a   : > { %p446_p2 = pnand %p449_p1, %p637_p6 }
 0x16c   : > { %562 = dma.done.wait (!%p446_p2), %s347_s25, 512  }
 0x16d   : > { %564 = vsyncadd (!%p446_p2), %s347_s25, 4294966784  ;;  %p11_p3 = scmp.ge.s32.totalorder %s620_s12, 4   ;;  %s815_s6 = smov %s571_s7 }
 0x16e   : > { %s816_s7 = smov %s575_s8  ;;  %s817_s8 = smov %s631_s15 }
 0x16f   : > { %s818_s9 = smov %s620_s12  ;;  %13 = sbr.rel (!%p11_p3) target bundleno = 3 (0x3), region = 59 }
 0x176   :  { %352 = vsyncpa [#allocation3], 1 }
 0x177   :  { %354 = vsyncpa [#allocation3 + $0x1], 1 }

</bundles_post_ra>
